<compile_context>
chip_gen: v5e
topology: v5e:2x2
jax: 0.10.0
libtpu: 0.0.40
codegen_flags: <defaults>
</compile_context>

<pallas_src>
import math

import jax
import jax.numpy as jnp
import numpy as np
from jax import lax
from jax.experimental import pallas as pl
from jax.experimental.pallas import tpu as pltpu


def _round_up(x, m):
    return ((x + m - 1) // m) * m


# ---------------------------------------------------------------------------
# non-factorized (biaffine) path
# ---------------------------------------------------------------------------
def _biaffine_kernel(x1_ref, x2_ref, wflat_ref, bias_ref, out_ref):
    tm = out_ref.shape[0]
    span = out_ref.shape[1]
    d2p = x2_ref.shape[1]

    x1 = x1_ref[...]                                   # (tm, d1b)
    x2 = x2_ref[...]                                   # (tm, d2p)

    # One lane-dense MXU matmul: (tm, d1b) @ (d1b, span * d2p)
    t = jnp.dot(x1, wflat_ref[...], preferred_element_type=jnp.float32)

    # Assemble the full (tm, span) block in registers; store once per step.
    lane = lax.broadcasted_iota(jnp.int32, (tm, span), 1)
    acc = jnp.broadcast_to(bias_ref[...], (tm, span))
    for o in range(span):                              # static unroll; 128-aligned slices
        s_o = jnp.sum(t[:, o * d2p:(o + 1) * d2p] * x2, axis=-1, keepdims=True)
        acc = acc + jnp.where(lane == o, s_o, 0.0)
    out_ref[...] = acc.astype(out_ref.dtype)


def biaf_encoder_pallas(x1, x2, weight, bias, *, bias_1=True, bias_2=True,
                        tm=256, vmem_limit_bytes=None):
    """Non-factorized BiafEncoder.forward. Handles 3-D or 4-D inputs."""
    lead = x1.shape[:-1]
    assert x2.shape[:-1] == lead
    d1, d2 = x1.shape[-1], x2.shape[-1]
    d1b, d2b = d1 + int(bias_1), d2 + int(bias_2)
    span = weight.shape[-1]
    assert weight.shape == (d1b, d2b, span)

    m = int(np.prod(lead)) if lead else 1
    x1f = x1.reshape(m, d1).astype(jnp.float32)
    x2f = x2.reshape(m, d2).astype(jnp.float32)
    if bias_1:
        x1f = jnp.concatenate([x1f, jnp.ones((m, 1), jnp.float32)], axis=-1)
    if bias_2:
        x2f = jnp.concatenate([x2f, jnp.ones((m, 1), jnp.float32)], axis=-1)

    # Pad the second feature axis to a lane multiple so per-channel slices of
    # T inside the kernel are 128-lane aligned (zero columns contribute 0).
    d2p = _round_up(d2b, 128)
    w = weight.astype(jnp.float32)
    if d2p != d2b:
        x2f = jnp.pad(x2f, ((0, 0), (0, d2p - d2b)))
        w = jnp.pad(w, ((0, 0), (0, d2p - d2b), (0, 0)))
    # W_flat[d, o * d2p + e] = weight[d, e, o]
    wflat = jnp.transpose(w, (0, 2, 1)).reshape(d1b, span * d2p)

    # Row tiling: any M is supported (pad rows; extra rows dropped at the end).
    tm_eff = min(tm, _round_up(m, 8))
    mp = _round_up(m, tm_eff)
    if mp != m:
        x1f = jnp.pad(x1f, ((0, mp - m), (0, 0)))
        x2f = jnp.pad(x2f, ((0, mp - m), (0, 0)))

    bias2d = bias.reshape(1, span).astype(jnp.float32)

    out = pl.pallas_call(
        _biaffine_kernel,
        out_shape=jax.ShapeDtypeStruct((mp, span), jnp.float32),
        grid=(mp // tm_eff,),
        in_specs=[
            pl.BlockSpec((tm_eff, d1b), lambda i: (i, 0)),
            pl.BlockSpec((tm_eff, d2p), lambda i: (i, 0)),
            pl.BlockSpec((d1b, span * d2p), lambda i: (0, 0)),   # resident weight
            pl.BlockSpec((1, span), lambda i: (0, 0)),           # bias (VMEM)
        ],
        out_specs=pl.BlockSpec((tm_eff, span), lambda i: (i, 0)),
        compiler_params=pltpu.CompilerParams(
            dimension_semantics=("parallel",),
            vmem_limit_bytes=vmem_limit_bytes),
    )(x1f, x2f, wflat, bias2d)

    return out[:m].reshape(*lead, span)


# ---------------------------------------------------------------------------
# factorized path: proj1 / proj2 / encoder fused into one kernel
# ---------------------------------------------------------------------------
def _factorized_kernel(x1_ref, x2_ref, p1_ref, c1_ref, p2_ref, c2_ref,
                       enc_ref, be_ref, out_ref):
    h1 = jnp.dot(x1_ref[...], p1_ref[...],
                 preferred_element_type=jnp.float32) + c1_ref[...]
    h2 = jnp.dot(x2_ref[...], p2_ref[...],
                 preferred_element_type=jnp.float32) + c2_ref[...]
    out = jnp.dot(h1 * h2, enc_ref[...],
                  preferred_element_type=jnp.float32) + be_ref[...]
    out_ref[...] = out.astype(out_ref.dtype)


def biaf_encoder_factorized_pallas(x1, x2, params, *, tm=256,
                                   vmem_limit_bytes=None):
    lead = x1.shape[:-1]
    d1, d2 = x1.shape[-1], x2.shape[-1]
    rank = params["p1"].shape[1]
    span = params["enc"].shape[1]

    m = int(np.prod(lead)) if lead else 1
    x1f = x1.reshape(m, d1).astype(jnp.float32)
    x2f = x2.reshape(m, d2).astype(jnp.float32)

    tm_eff = min(tm, _round_up(m, 8))
    mp = _round_up(m, tm_eff)
    if mp != m:
        x1f = jnp.pad(x1f, ((0, mp - m), (0, 0)))
        x2f = jnp.pad(x2f, ((0, mp - m), (0, 0)))

    p1 = params["p1"].astype(jnp.float32)
    p2 = params["p2"].astype(jnp.float32)
    enc = params["enc"].astype(jnp.float32)
    c1 = params["c1"].reshape(1, rank).astype(jnp.float32)
    c2 = params["c2"].reshape(1, rank).astype(jnp.float32)
    be = params["be"].reshape(1, span).astype(jnp.float32)

    def full(a):
        nd = a.ndim
        return pl.BlockSpec(a.shape, lambda i, _nd=nd: (0,) * _nd)

    out = pl.pallas_call(
        _factorized_kernel,
        out_shape=jax.ShapeDtypeStruct((mp, span), jnp.float32),
        grid=(mp // tm_eff,),
        in_specs=[pl.BlockSpec((tm_eff, d1), lambda i: (i, 0)),
                  pl.BlockSpec((tm_eff, d2), lambda i: (i, 0)),
                  full(p1), full(c1), full(p2), full(c2), full(enc), full(be)],
        out_specs=pl.BlockSpec((tm_eff, span), lambda i: (i, 0)),
        compiler_params=pltpu.CompilerParams(
            dimension_semantics=("parallel",),
            vmem_limit_bytes=vmem_limit_bytes),
    )(x1f, x2f, p1, c1, p2, c2, enc, be)

    return out[:m].reshape(*lead, span)


# ---------------------------------------------------------------------------
# pure-JAX references
# ---------------------------------------------------------------------------
def biaf_encoder_ref(x1, x2, weight, bias, *, bias_1=True, bias_2=True):
    if bias_1:
        x1 = jnp.concatenate([x1, jnp.ones_like(x1[..., :1])], axis=-1)
    if bias_2:
        x2 = jnp.concatenate([x2, jnp.ones_like(x2[..., :1])], axis=-1)
    out = jnp.einsum('...d,...e,deo->...o', x1, x2, weight)
    return out + bias


def biaf_encoder_factorized_ref(x1, x2, p):
    h1 = x1 @ p["p1"] + p["c1"]
    h2 = x2 @ p["p2"] + p["c2"]
    return (h1 * h2) @ p["enc"] + p["be"]


if __name__ == "__main__":
    B, N, D1, D2, SPAN, RANK = 2, 8, 32, 32, 8, 64
    key = jax.random.PRNGKey(0)
    kw, k1, k2, k3, k4, kp1, kp2, ke = jax.random.split(key, 8)

    # ---- non-factorized (default) path: 3-D inputs --------------------------
    d1b, d2b = D1 + 1, D2 + 1
    xav_std = math.sqrt(2.0 / (d1b * SPAN + d2b * SPAN))
    weight = xav_std * jax.random.normal(kw, (d1b, d2b, SPAN), jnp.float32)
    bias = jnp.zeros((SPAN,), jnp.float32)

    x1 = jax.random.normal(k1, (B, N, D1), jnp.float32)
    x2 = jax.random.normal(k2, (B, N, D2), jnp.float32)

    out = jax.block_until_ready(biaf_encoder_pallas(x1, x2, weight, bias))
    ref = jax.block_until_ready(biaf_encoder_ref(x1, x2, weight, bias))
    np.testing.assert_allclose(np.asarray(out), np.asarray(ref),
                               atol=1e-4, rtol=1e-4)

    # ---- non-factorized path: 4-D inputs ('bnmd,bnme,deo->bnmo') ------------
    x1_4d = jax.random.normal(k3, (B, 4, 4, D1), jnp.float32)
    x2_4d = jax.random.normal(k4, (B, 4, 4, D2), jnp.float32)
    out4 = jax.block_until_ready(biaf_encoder_pallas(x1_4d, x2_4d, weight, bias))
    ref4 = jax.block_until_ready(biaf_encoder_ref(x1_4d, x2_4d, weight, bias))
    np.testing.assert_allclose(np.asarray(out4), np.asarray(ref4),
                               atol=1e-4, rtol=1e-4)

    # ---- factorized path -----------------------------------------------------
    def lin(k, fin, fout):
        bound = 1.0 / math.sqrt(fin)
        return jax.random.uniform(k, (fin, fout), jnp.float32, -bound, bound)

    fparams = {
        "p1": lin(kp1, D1, RANK), "c1": jnp.zeros((RANK,), jnp.float32),
        "p2": lin(kp2, D2, RANK), "c2": jnp.zeros((RANK,), jnp.float32),
        "enc": lin(ke, RANK, SPAN), "be": jnp.zeros((SPAN,), jnp.float32),
    }
    outf = jax.block_until_ready(biaf_encoder_factorized_pallas(x1, x2, fparams))
    reff = jax.block_until_ready(biaf_encoder_factorized_ref(x1, x2, fparams))
    np.testing.assert_allclose(np.asarray(outf), np.asarray(reff),
                               atol=1e-4, rtol=1e-4)

    print("KERNEL_OK")
</pallas_src>

<mosaic_0001>
module attributes {stable_mosaic.version = 11 : i64} {
  func.func @_biaffine_kernel(%arg0: i32, %arg1: memref<16x33xf32, #tpu.memory_space<vmem>>, %arg2: memref<16x128xf32, #tpu.memory_space<vmem>>, %arg3: memref<33x1024xf32, #tpu.memory_space<vmem>>, %arg4: memref<1x8xf32, #tpu.memory_space<vmem>>, %arg5: memref<16x8xf32, #tpu.memory_space<vmem>>) attributes {dimension_semantics = [#tpu.dimension_semantics<parallel>], iteration_bounds = array<i64: 1>, scalar_prefetch = 0 : i64, scratch_operands = 0 : i64, tpu.core_type = #tpu.core_type<tc>, window_params = [{transform_indices = @transform_0, window_bounds = array<i64: 16, 33>}, {transform_indices = @transform_1, window_bounds = array<i64: 16, 128>}, {pipeline_mode = #tpu.pipeline_mode<synchronous>, transform_indices = @transform_2, window_bounds = array<i64: 33, 1024>}, {pipeline_mode = #tpu.pipeline_mode<synchronous>, transform_indices = @transform_3, window_bounds = array<i64: 1, 8>}, {transform_indices = @transform_4, window_bounds = array<i64: 16, 8>}]} {
    %c0 = arith.constant 0 : index
    %c0_0 = arith.constant 0 : index
    %0 = vector.load %arg1[%c0, %c0_0] : memref<16x33xf32, #tpu.memory_space<vmem>>, vector<16x33xf32>
    %c0_1 = arith.constant 0 : index
    %c0_2 = arith.constant 0 : index
    %1 = vector.load %arg2[%c0_1, %c0_2] : memref<16x128xf32, #tpu.memory_space<vmem>>, vector<16x128xf32>
    %c0_3 = arith.constant 0 : index
    %c0_4 = arith.constant 0 : index
    %2 = vector.load %arg3[%c0_3, %c0_4] : memref<33x1024xf32, #tpu.memory_space<vmem>>, vector<33x1024xf32>
    %cst = arith.constant dense<0.000000e+00> : vector<16x1024xf32>
    %3 = tpu.matmul %0, %2, %cst {dimension_numbers = #tpu.dot_dimension_numbers<[1], [0], [0], [1], [0, 0, 1, 1], [], []>} : vector<16x33xf32>, vector<33x1024xf32>, vector<16x1024xf32> -> vector<16x1024xf32>
    %4 = tpu.iota {dimensions = array<i32: 1>} : vector<16x8xi32>
    %c0_5 = arith.constant 0 : index
    %c0_6 = arith.constant 0 : index
    %5 = vector.load %arg4[%c0_5, %c0_6] : memref<1x8xf32, #tpu.memory_space<vmem>>, vector<1x8xf32>
    %6 = vector.shape_cast %5 : vector<1x8xf32> to vector<1x8xf32>
    %7 = vector.broadcast %6 : vector<1x8xf32> to vector<16x8xf32>
    %8 = vector.extract_strided_slice %3 {offsets = [0, 0], sizes = [16, 128], strides = [1, 1]} : vector<16x1024xf32> to vector<16x128xf32>
    %9 = arith.mulf %8, %1 : vector<16x128xf32>
    %cst_7 = arith.constant dense<0.000000e+00> : vector<16xf32>
    %10 = vector.multi_reduction <add>, %9, %cst_7 [1] : vector<16x128xf32> to vector<16xf32>
    %11 = vector.shape_cast %10 : vector<16xf32> to vector<16x1xf32>
    %c0_i32 = arith.constant 0 : i32
    %12 = vector.broadcast %c0_i32 : i32 to vector<16x8xi32>
    %13 = arith.cmpi eq, %4, %12 : vector<16x8xi32>
    %cst_8 = arith.constant 0.000000e+00 : f32
    %14 = vector.shape_cast %11 : vector<16x1xf32> to vector<16x1xf32>
    %15 = vector.broadcast %14 : vector<16x1xf32> to vector<16x8xf32>
    %16 = vector.broadcast %cst_8 : f32 to vector<16x8xf32>
    %17 = arith.select %13, %15, %16 : vector<16x8xi1>, vector<16x8xf32>
    %18 = arith.addf %7, %17 : vector<16x8xf32>
    %19 = vector.extract_strided_slice %3 {offsets = [0, 128], sizes = [16, 128], strides = [1, 1]} : vector<16x1024xf32> to vector<16x128xf32>
    %20 = arith.mulf %19, %1 : vector<16x128xf32>
    %cst_9 = arith.constant dense<0.000000e+00> : vector<16xf32>
    %21 = vector.multi_reduction <add>, %20, %cst_9 [1] : vector<16x128xf32> to vector<16xf32>
    %22 = vector.shape_cast %21 : vector<16xf32> to vector<16x1xf32>
    %c1_i32 = arith.constant 1 : i32
    %23 = vector.broadcast %c1_i32 : i32 to vector<16x8xi32>
    %24 = arith.cmpi eq, %4, %23 : vector<16x8xi32>
    %cst_10 = arith.constant 0.000000e+00 : f32
    %25 = vector.shape_cast %22 : vector<16x1xf32> to vector<16x1xf32>
    %26 = vector.broadcast %25 : vector<16x1xf32> to vector<16x8xf32>
    %27 = vector.broadcast %cst_10 : f32 to vector<16x8xf32>
    %28 = arith.select %24, %26, %27 : vector<16x8xi1>, vector<16x8xf32>
    %29 = arith.addf %18, %28 : vector<16x8xf32>
    %30 = vector.extract_strided_slice %3 {offsets = [0, 256], sizes = [16, 128], strides = [1, 1]} : vector<16x1024xf32> to vector<16x128xf32>
    %31 = arith.mulf %30, %1 : vector<16x128xf32>
    %cst_11 = arith.constant dense<0.000000e+00> : vector<16xf32>
    %32 = vector.multi_reduction <add>, %31, %cst_11 [1] : vector<16x128xf32> to vector<16xf32>
    %33 = vector.shape_cast %32 : vector<16xf32> to vector<16x1xf32>
    %c2_i32 = arith.constant 2 : i32
    %34 = vector.broadcast %c2_i32 : i32 to vector<16x8xi32>
    %35 = arith.cmpi eq, %4, %34 : vector<16x8xi32>
    %cst_12 = arith.constant 0.000000e+00 : f32
    %36 = vector.shape_cast %33 : vector<16x1xf32> to vector<16x1xf32>
    %37 = vector.broadcast %36 : vector<16x1xf32> to vector<16x8xf32>
    %38 = vector.broadcast %cst_12 : f32 to vector<16x8xf32>
    %39 = arith.select %35, %37, %38 : vector<16x8xi1>, vector<16x8xf32>
    %40 = arith.addf %29, %39 : vector<16x8xf32>
    %41 = vector.extract_strided_slice %3 {offsets = [0, 384], sizes = [16, 128], strides = [1, 1]} : vector<16x1024xf32> to vector<16x128xf32>
    %42 = arith.mulf %41, %1 : vector<16x128xf32>
    %cst_13 = arith.constant dense<0.000000e+00> : vector<16xf32>
    %43 = vector.multi_reduction <add>, %42, %cst_13 [1] : vector<16x128xf32> to vector<16xf32>
    %44 = vector.shape_cast %43 : vector<16xf32> to vector<16x1xf32>
    %c3_i32 = arith.constant 3 : i32
    %45 = vector.broadcast %c3_i32 : i32 to vector<16x8xi32>
    %46 = arith.cmpi eq, %4, %45 : vector<16x8xi32>
    %cst_14 = arith.constant 0.000000e+00 : f32
    %47 = vector.shape_cast %44 : vector<16x1xf32> to vector<16x1xf32>
    %48 = vector.broadcast %47 : vector<16x1xf32> to vector<16x8xf32>
    %49 = vector.broadcast %cst_14 : f32 to vector<16x8xf32>
    %50 = arith.select %46, %48, %49 : vector<16x8xi1>, vector<16x8xf32>
    %51 = arith.addf %40, %50 : vector<16x8xf32>
    %52 = vector.extract_strided_slice %3 {offsets = [0, 512], sizes = [16, 128], strides = [1, 1]} : vector<16x1024xf32> to vector<16x128xf32>
    %53 = arith.mulf %52, %1 : vector<16x128xf32>
    %cst_15 = arith.constant dense<0.000000e+00> : vector<16xf32>
    %54 = vector.multi_reduction <add>, %53, %cst_15 [1] : vector<16x128xf32> to vector<16xf32>
    %55 = vector.shape_cast %54 : vector<16xf32> to vector<16x1xf32>
    %c4_i32 = arith.constant 4 : i32
    %56 = vector.broadcast %c4_i32 : i32 to vector<16x8xi32>
    %57 = arith.cmpi eq, %4, %56 : vector<16x8xi32>
    %cst_16 = arith.constant 0.000000e+00 : f32
    %58 = vector.shape_cast %55 : vector<16x1xf32> to vector<16x1xf32>
    %59 = vector.broadcast %58 : vector<16x1xf32> to vector<16x8xf32>
    %60 = vector.broadcast %cst_16 : f32 to vector<16x8xf32>
    %61 = arith.select %57, %59, %60 : vector<16x8xi1>, vector<16x8xf32>
    %62 = arith.addf %51, %61 : vector<16x8xf32>
    %63 = vector.extract_strided_slice %3 {offsets = [0, 640], sizes = [16, 128], strides = [1, 1]} : vector<16x1024xf32> to vector<16x128xf32>
    %64 = arith.mulf %63, %1 : vector<16x128xf32>
    %cst_17 = arith.constant dense<0.000000e+00> : vector<16xf32>
    %65 = vector.multi_reduction <add>, %64, %cst_17 [1] : vector<16x128xf32> to vector<16xf32>
    %66 = vector.shape_cast %65 : vector<16xf32> to vector<16x1xf32>
    %c5_i32 = arith.constant 5 : i32
    %67 = vector.broadcast %c5_i32 : i32 to vector<16x8xi32>
    %68 = arith.cmpi eq, %4, %67 : vector<16x8xi32>
    %cst_18 = arith.constant 0.000000e+00 : f32
    %69 = vector.shape_cast %66 : vector<16x1xf32> to vector<16x1xf32>
    %70 = vector.broadcast %69 : vector<16x1xf32> to vector<16x8xf32>
    %71 = vector.broadcast %cst_18 : f32 to vector<16x8xf32>
    %72 = arith.select %68, %70, %71 : vector<16x8xi1>, vector<16x8xf32>
    %73 = arith.addf %62, %72 : vector<16x8xf32>
    %74 = vector.extract_strided_slice %3 {offsets = [0, 768], sizes = [16, 128], strides = [1, 1]} : vector<16x1024xf32> to vector<16x128xf32>
    %75 = arith.mulf %74, %1 : vector<16x128xf32>
    %cst_19 = arith.constant dense<0.000000e+00> : vector<16xf32>
    %76 = vector.multi_reduction <add>, %75, %cst_19 [1] : vector<16x128xf32> to vector<16xf32>
    %77 = vector.shape_cast %76 : vector<16xf32> to vector<16x1xf32>
    %c6_i32 = arith.constant 6 : i32
    %78 = vector.broadcast %c6_i32 : i32 to vector<16x8xi32>
    %79 = arith.cmpi eq, %4, %78 : vector<16x8xi32>
    %cst_20 = arith.constant 0.000000e+00 : f32
    %80 = vector.shape_cast %77 : vector<16x1xf32> to vector<16x1xf32>
    %81 = vector.broadcast %80 : vector<16x1xf32> to vector<16x8xf32>
    %82 = vector.broadcast %cst_20 : f32 to vector<16x8xf32>
    %83 = arith.select %79, %81, %82 : vector<16x8xi1>, vector<16x8xf32>
    %84 = arith.addf %73, %83 : vector<16x8xf32>
    %85 = vector.extract_strided_slice %3 {offsets = [0, 896], sizes = [16, 128], strides = [1, 1]} : vector<16x1024xf32> to vector<16x128xf32>
    %86 = arith.mulf %85, %1 : vector<16x128xf32>
    %cst_21 = arith.constant dense<0.000000e+00> : vector<16xf32>
    %87 = vector.multi_reduction <add>, %86, %cst_21 [1] : vector<16x128xf32> to vector<16xf32>
    %88 = vector.shape_cast %87 : vector<16xf32> to vector<16x1xf32>
    %c7_i32 = arith.constant 7 : i32
    %89 = vector.broadcast %c7_i32 : i32 to vector<16x8xi32>
    %90 = arith.cmpi eq, %4, %89 : vector<16x8xi32>
    %cst_22 = arith.constant 0.000000e+00 : f32
    %91 = vector.shape_cast %88 : vector<16x1xf32> to vector<16x1xf32>
    %92 = vector.broadcast %91 : vector<16x1xf32> to vector<16x8xf32>
    %93 = vector.broadcast %cst_22 : f32 to vector<16x8xf32>
    %94 = arith.select %90, %92, %93 : vector<16x8xi1>, vector<16x8xf32>
    %95 = arith.addf %84, %94 : vector<16x8xf32>
    %c0_23 = arith.constant 0 : index
    %c0_24 = arith.constant 0 : index
    %96 = vector.load %arg5[%c0_23, %c0_24] : memref<16x8xf32, #tpu.memory_space<vmem>>, vector<16x8xf32>
    tpu.vector_store %arg5[%c0_23, %c0_24], %95 {strides = array<i32>} : memref<16x8xf32, #tpu.memory_space<vmem>>, vector<16x8xf32>,
    return
  }
  func.func @transform_0(%arg0: i32) -> (i32, i32) {
    %c0_i32 = arith.constant 0 : i32
    %c0_i32_0 = arith.constant 0 : i32
    return %arg0, %c0_i32 : i32, i32
  }
  func.func @transform_1(%arg0: i32) -> (i32, i32) {
    %c0_i32 = arith.constant 0 : i32
    %c0_i32_0 = arith.constant 0 : i32
    return %arg0, %c0_i32 : i32, i32
  }
  func.func @transform_2(%arg0: i32) -> (i32, i32) {
    %c0_i32 = arith.constant 0 : i32
    %c0_i32_0 = arith.constant 0 : i32
    %c0_i32_1 = arith.constant 0 : i32
    return %c0_i32, %c0_i32_0 : i32, i32
  }
  func.func @transform_3(%arg0: i32) -> (i32, i32) {
    %c0_i32 = arith.constant 0 : i32
    %c0_i32_0 = arith.constant 0 : i32
    %c0_i32_1 = arith.constant 0 : i32
    return %c0_i32, %c0_i32_0 : i32, i32
  }
  func.func @transform_4(%arg0: i32) -> (i32, i32) {
    %c0_i32 = arith.constant 0 : i32
    %c0_i32_0 = arith.constant 0 : i32
    return %arg0, %c0_i32 : i32, i32
  }
}

</mosaic_0001>

<bundles_post_ra>
// kernel: tpu_custom_call.1
= control target key start
LH: loop header
LB: loop body
LE: loop exit
PB: predicated region body
PF: predicated region fallthrough
CT: control target
= control target key end

     0   :  { %9 = vsyncpa [#allocation3], 0  ;;  %s609_s0 = inlined_call_operand.hbm [shape: f32[16,33], index: 0, kind: input, shape index: {}]   ;;  %s610_s1 = inlined_call_operand.hbm [shape: f32[16,128], index: 1, kind: input, shape index: {}]   ;;  %s611_s2 = inlined_call_operand.hbm [shape: f32[33,1024], index: 2, kind: input, shape index: {}]   ;;  %s612_s3 = inlined_call_operand.vmem [shape: f32[1,8], index: 3, kind: input, shape index: {}]   ;;  %s613_s4 = inlined_call_operand.vmem [shape: f32[16,8], index: 4, kind: output, shape index: {}]  }
   0x1   :  { %10 = vsyncpa [#allocation5], 0  ;;  %s28_s17 = sshll.u32 %s610_s1, 4  ;;  %s535_s18 = smov [#allocation4]   ;;  %s29_s17 = int_to_ptr.hbm [resolvable:$true] %s28_s17 }
   0x2   :  { %s30_s19 = sshll.u32 %s535_s18, 4  ;;  %s15_s22 = sshll.u32 %s609_s0, 4  ;;  %s31_s19 = int_to_ptr.vmem [resolvable:$true] %s30_s19  ;;  %s16_s22 = int_to_ptr.hbm [resolvable:$true] %s15_s22 }
   0x3   :  { %s536_s23 = smov 128   ;;  %s537_s24 = smov 8  }
   0x4   :  { %36 = dma.hbm_to_vmem [thread:$0]  %s29_s17, 256, %s31_s19, [#allocation5], %s536_s23, %s536_s23, %s537_s24  }
   0x5   :  { %s538_s25 = smov [#allocation2]   ;;  %s41_s29 = sshll.u32 %s611_s2, 4  ;;  %s42_s29 = int_to_ptr.hbm [resolvable:$true] %s41_s29 }
   0x6   :  { %s17_s26 = sshll.u32 %s538_s25, 4  ;;  %s539_s1 = smov [#allocation6]   ;;  %s18_s26 = int_to_ptr.vmem [resolvable:$true] %s17_s26 }
   0x7   :  { %23 = dma.hbm_to_vmem [thread:$0]  %s16_s22, 256, %s18_s26, [#allocation3], %s536_s23, %s536_s23, %s537_s24  }
   0x8   :  { %s43_s30 = sshll.u32 %s539_s1, 4  ;;  %s540_s5 = smov 1024   ;;  %s44_s30 = int_to_ptr.vmem [resolvable:$true] %s43_s30 }
   0x9   :  { %s541_s6 = smov 64  }
   0xa   :  { %49 = dma.hbm_to_vmem [thread:$0]  %s42_s29, 5120, %s44_s30, [#allocation5], %s540_s5, %s540_s5, %s541_s6  }
   0xb   :  { %531 = dma.done.wait [#allocation3], 256  }
   0xc   :  { %532 = vsyncadd [#allocation3], 4294967040 }
   0xd   :  { %533 = dma.done.wait [#allocation5], 5376  }
   0xe   :  { %534 = vsyncadd [#allocation5], 4294961920  ;;  %vm115_vm0 = vcmask 1040384   ;;  %v100_v0 = vld [vmem:[#allocation6 + $0x100] sm:$0x1]  ;;  %v93_v4 = vld [vmem:[#allocation6 + $0xc8] sm:$0xff] }
   0xf   :  { %v101_v1 = vld [vmem:[#allocation6 + $0x108] sm:$0x1]  ;;  %v102_v2 = vld [vmem:[#allocation6 + $0x110] sm:$0x1]  ;;  %427 = vmatpush.msk.msra.mxu0 %vm115_vm0, %v100_v0  ;;  %v92_v3 = vld [vmem:[#allocation6 + $0xc0] sm:$0xff]  ;;  %vm108_vm1 = vcmask 269312  }
  0x10   :  { %430 = vmatpush.msk.msra.mxu1 %vm115_vm0, %v101_v1  ;;  %v94_v5 = vld [vmem:[#allocation6 + $0xd0] sm:$0xff]  ;;  %433 = vmatpush.msk.msra.mxu2 %vm115_vm0, %v102_v2  ;;  %v103_v6 = vld [vmem:[#allocation6 + $0x118] sm:$0x1]  ;;  %v84_v7 = vld [vmem:[#allocation6 + $0x80] sm:$0xff]  ;;  %vm418_vm10 = vcmask 64512  }
  0x11   :  { %v85_v8 = vld [vmem:[#allocation6 + $0x88] sm:$0xff]  ;;  %152 = vmatpush.msra.mxu0 %v92_v3  ;;  %v86_v9 = vld [vmem:[#allocation6 + $0x90] sm:$0xff]  ;;  %v95_v10 = vld [vmem:[#allocation6 + $0xd8] sm:$0xff]  ;;  %436 = vmatpush.msk.msra.mxu3 %vm115_vm0, %v103_v6 }
  0x12   :  { %175 = vmatpush.msra.mxu1 %v93_v4  ;;  %198 = vmatpush.msra.mxu2 %v94_v5  ;;  %v76_v11 = vld [vmem:[#allocation6 + $0x40] sm:$0xff]  ;;  %v77_v12 = vld [vmem:[#allocation6 + $0x48] sm:$0xff]  ;;  %v78_v13 = vld [vmem:[#allocation6 + $0x50] sm:$0xff] }
  0x13   :  { %153 = vmatpush.msra.mxu0 %v84_v7  ;;  %v87_v14 = vld [vmem:[#allocation6 + $0x98] sm:$0xff]  ;;  %221 = vmatpush.msra.mxu3 %v95_v10  ;;  %v68_v15 = vld [vmem:[#allocation6] sm:$0xff]  ;;  %v69_v16 = vld [vmem:[#allocation6 + $0x8] sm:$0xff] }
  0x14   :  { %176 = vmatpush.msra.mxu1 %v85_v8  ;;  %199 = vmatpush.msra.mxu2 %v86_v9  ;;  %v70_v17 = vld [vmem:[#allocation6 + $0x10] sm:$0xff]  ;;  %v79_v18 = vld [vmem:[#allocation6 + $0x58] sm:$0xff]  ;;  %v64_v19 = vld [vmem:[#allocation2] sm:$0xff] }
  0x15   :  { %154 = vmatpush.msra.mxu0 %v76_v11  ;;  %222 = vmatpush.msra.mxu3 %v87_v14  ;;  %v71_v20 = vld [vmem:[#allocation6 + $0x18] sm:$0xff]  ;;  %v106_v21 = vld [vmem:[#allocation6 + $0x130] sm:$0x1]  ;;  %v104_v22 = vld [vmem:[#allocation6 + $0x120] sm:$0x1]  ;;  %v324_v14 = vlaneseq }
  0x16   :  { %177 = vmatpush.msra.mxu1 %v77_v12  ;;  %200 = vmatpush.msra.mxu2 %v78_v13  ;;  %v105_v23 = vld [vmem:[#allocation6 + $0x128] sm:$0x1]  ;;  %v98_v24 = vld [vmem:[#allocation6 + $0xf0] sm:$0xff]  ;;  %v107_v25 = vld [vmem:[#allocation6 + $0x138] sm:$0x1] }
  0x17   :  { %155 = vmatpush.msra.mxu0 %v68_v15  ;;  %223 = vmatpush.msra.mxu3 %v79_v18  ;;  %v96_v26 = vld [vmem:[#allocation6 + $0xe0] sm:$0xff]  ;;  %v97_v27 = vld [vmem:[#allocation6 + $0xe8] sm:$0xff]  ;;  %v90_v28 = vld [vmem:[#allocation6 + $0xb0] sm:$0xff]  ;;  %v325_v18 = vand.u32 127, %v324_v14 }
  0x18   :  { %178 = vmatpush.msra.mxu1 %v69_v16  ;;  %201 = vmatpush.msra.mxu2 %v70_v17  ;;  %v99_v29 = vld [vmem:[#allocation6 + $0xf8] sm:$0xff]  ;;  %v88_v30 = vld [vmem:[#allocation6 + $0xa0] sm:$0xff]  ;;  %v89_v31 = vld [vmem:[#allocation6 + $0xa8] sm:$0xff] }
  0x19   :  { %428 = vmatmul.msk.f32.vlgmr.msra.gmra.mxu0 %vm108_vm1, %v64_v19  ;;  %431 = vmatmul.msk.f32.vlgmr.msra.gmra.mxu1 %vm108_vm1, %v64_v19  ;;  %v65_v32 = vld [vmem:[#allocation2 + $0x8] sm:$0xff]  ;;  %v82_v33 = vld [vmem:[#allocation6 + $0x70] sm:$0xff]  ;;  %v91_v35 = vld [vmem:[#allocation6 + $0xb8] sm:$0xff]  ;;  %vm336_vm2 = vcmp.eq.s32.totalorder %v325_v18, 0  ;;  %vm347_vm3 = vcmp.eq.s32.totalorder %v325_v18, 1  ;;  %vm358_vm4 = vcmp.eq.s32.totalorder %v325_v18, 2 }
  0x1a   :  { %434 = vmatmul.msk.f32.vlgmr.msra.gmra.mxu2 %vm108_vm1, %v64_v19  ;;  %224 = vmatpush.msra.mxu3 %v71_v20  ;;  %v74_v34 = vld [vmem:[#allocation6 + $0x30] sm:$0xff]  ;;  %v80_v36 = vld [vmem:[#allocation6 + $0x60] sm:$0xff]  ;;  %v81_v37 = vld [vmem:[#allocation6 + $0x68] sm:$0xff]  ;;  %vm369_vm5 = vcmp.eq.s32.totalorder %v325_v18, 3  ;;  %vm380_vm6 = vcmp.eq.s32.totalorder %v325_v18, 4  ;;  %vm391_vm7 = vcmp.eq.s32.totalorder %v325_v18, 5 }
  0x1b   :  { %437 = vmatmul.msk.f32.vlgmr.msra.gmra.mxu3 %vm108_vm1, %v64_v19  ;;  %445 = vmatpush.msk.msrb.mxu2 %vm115_vm0, %v106_v21  ;;  %v83_v38 = vld [vmem:[#allocation6 + $0x78] sm:$0xff]  ;;  %v72_v39 = vld [vmem:[#allocation6 + $0x20] sm:$0xff]  ;;  %v73_v40 = vld [vmem:[#allocation6 + $0x28] sm:$0xff]  ;;  %vm402_vm8 = vcmp.eq.s32.totalorder %v325_v18, 6  ;;  %vm413_vm9 = vcmp.eq.s32.totalorder %v325_v18, 7 }
  0x1c   :  { %439 = vmatpush.msk.msrb.mxu0 %vm115_vm0, %v104_v22  ;;  %442 = vmatpush.msk.msrb.mxu1 %vm115_vm0, %v105_v23  ;;  %v75_v41 = vld [vmem:[#allocation6 + $0x38] sm:$0xff]  ;;  %v66_v42 = vld [vmem:[#allocation4] sm:$0xff] }
  0x1d   :  { %290 = vmatpush.msrb.mxu2 %v98_v24  ;;  %448 = vmatpush.msk.msrb.mxu3 %vm115_vm0, %v107_v25  ;;  %v67_v47 = vld [vmem:[#allocation4 + $0x8] sm:$0xff] }
  0x1e   :  { %244 = vmatpush.msrb.mxu0 %v96_v26  ;;  %267 = vmatpush.msrb.mxu1 %v97_v27 }
  0x1f   :  { %291 = vmatpush.msrb.mxu2 %v90_v28  ;;  %313 = vmatpush.msrb.mxu3 %v99_v29 }
  0x20   :  { %245 = vmatpush.msrb.mxu0 %v88_v30  ;;  %268 = vmatpush.msrb.mxu1 %v89_v31 }
  0x21   :  { %432 = vmatmul.msk.f32.gmra.mxu1 %vm108_vm1, %v65_v32  ;;  %292 = vmatpush.msrb.mxu2 %v82_v33 }
  0x22   :  { %435 = vmatmul.msk.f32.gmra.mxu2 %vm108_vm1, %v65_v32  ;;  %429 = vmatmul.msk.f32.gmra.mxu0 %vm108_vm1, %v65_v32 }
  0x23   :  { %438 = vmatmul.msk.f32.gmra.mxu3 %vm108_vm1, %v65_v32  ;;  %293 = vmatpush.msrb.mxu2 %v74_v34 }
  0x24   :  { %314 = vmatpush.msrb.mxu3 %v91_v35  ;;  %246 = vmatpush.msrb.mxu0 %v80_v36 }
  0x25   :  { %269 = vmatpush.msrb.mxu1 %v81_v37 }
  0x26   :  { %315 = vmatpush.msrb.mxu3 %v83_v38  ;;  %247 = vmatpush.msrb.mxu0 %v72_v39 }
  0x27   :  { %270 = vmatpush.msrb.mxu1 %v73_v40 }
  0x28   :  { %316 = vmatpush.msrb.mxu3 %v75_v41 }
  0x29   :  { %443 = vmatmul.msk.f32.vlgmr.msrb.gmra.mxu1 %vm108_vm1, %v64_v19 }
  0x2a   :  { %446 = vmatmul.msk.f32.vlgmr.msrb.gmra.mxu2 %vm108_vm1, %v64_v19  ;;  %440 = vmatmul.msk.f32.vlgmr.msrb.gmra.mxu0 %vm108_vm1, %v64_v19 }
  0x2b   :  { %449 = vmatmul.msk.f32.vlgmr.msrb.gmra.mxu3 %vm108_vm1, %v64_v19  ;;  %v458_v19 = vld [vmem:[%s612_s3] ss:$0 sm:$0xff] }
  0x31   :  { %444 = vmatmul.msk.f32.gmra.mxu1 %vm108_vm1, %v65_v32 }
  0x32   :  { %447 = vmatmul.msk.f32.gmra.mxu2 %vm108_vm1, %v65_v32  ;;  %441 = vmatmul.msk.f32.gmra.mxu0 %vm108_vm1, %v65_v32 }
  0x33   :  { %450 = vmatmul.msk.f32.gmra.mxu3 %vm108_vm1, %v65_v32 }
  0x96   :  { %v157_v43 = vpop.f32.mrf.mxu0  ;;  %v180_v44 = vpop.f32.mrf.mxu1 }
  0x97   :  { %v341_v45 = vmul.f32 %v180_v44, %v66_v42  ;;  %v330_v46 = vmul.f32 %v157_v43, %v66_v42 }
  0x99   :  { %343 = vadd.xlane.f32.xlu1 %v341_v45  ;;  %332 = vadd.xlane.f32.xlu0 %v330_v46 }
  0x9d   :  { %v203_v48 = vpop.f32.mrf.mxu2 }
  0x9e   :  { %v183_v49 = vpop.f32.mrf.mxu1  ;;  %v226_v50 = vpop.f32.mrf.mxu3  ;;  %v352_v51 = vmul.f32 %v203_v48, %v66_v42 }
  0x9f   :  { %v342_v52 = vmul.f32 %v183_v49, %v67_v47  ;;  %v363_v53 = vmul.f32 %v226_v50, %v66_v42  ;;  %v160_v54 = vpop.f32.mrf.mxu0 }
  0xa0   :  { %354 = vadd.xlane.f32.xlu2 %v352_v51  ;;  %v331_v55 = vmul.f32 %v160_v54, %v67_v47 }
  0xa1   :  { %345 = vadd.xlane.f32.xlu1 %v342_v52  ;;  %365 = vadd.xlane.f32.xlu0 %v363_v53 }
  0xa5   :  { %v206_v56 = vpop.f32.mrf.mxu2 }
  0xa6   :  { %v353_v57 = vmul.f32 %v206_v56, %v67_v47  ;;  %v229_v58 = vpop.f32.mrf.mxu3  ;;  %v272_v60 = vpop.f32.mrf.mxu1 }
  0xa7   :  { %v364_v59 = vmul.f32 %v229_v58, %v67_v47  ;;  %v249_v61 = vpop.f32.mrf.mxu0  ;;  %v385_v63 = vmul.f32 %v272_v60, %v66_v42 }
  0xa8   :  { %356 = vadd.xlane.f32.xlu2 %v353_v57  ;;  %v374_v62 = vmul.f32 %v249_v61, %v66_v42 }
  0xa9   :  { %367 = vadd.xlane.f32.xlu1 %v364_v59  ;;  %334 = vadd.xlane.f32.xlu0 %v331_v55 }
  0xad   :  { %v295_v0 = vpop.f32.mrf.mxu2 }
  0xae   :  { %v396_v1 = vmul.f32 %v295_v0, %v66_v42  ;;  %v318_v2 = vpop.f32.mrf.mxu3  ;;  %v275_v3 = vpop.f32.mrf.mxu1 }
  0xaf   :  { %v252_v4 = vpop.f32.mrf.mxu0  ;;  %v386_v5 = vmul.f32 %v275_v3, %v67_v47  ;;  %v407_v11 = vmul.f32 %v318_v2, %v66_v42 }
  0xb0   :  { %376 = vadd.xlane.f32.xlu2 %v374_v62  ;;  %v375_v6 = vmul.f32 %v252_v4, %v67_v47 }
  0xb1   :  { %387 = vadd.xlane.f32.xlu1 %v385_v63  ;;  %398 = vadd.xlane.f32.xlu0 %v396_v1 }
  0xb5   :  { %v298_v7 = vpop.f32.mrf.mxu2 }
  0xb6   :  { %v397_v8 = vmul.f32 %v298_v7, %v67_v47  ;;  %v321_v9 = vpop.f32.mrf.mxu3 }
  0xb7   :  { %v408_v10 = vmul.f32 %v321_v9, %v67_v47 }
  0xb8   :  { %389 = vadd.xlane.f32.xlu2 %v386_v5 }
  0xb9   :  { %378 = vadd.xlane.f32.xlu0 %v375_v6  ;;  %400 = vadd.xlane.f32.xlu1 %v397_v8 }
  0xc0   :  { %409 = vadd.xlane.f32.xlu2 %v407_v11 }
  0xc1   :  { %411 = vadd.xlane.f32.xlu0 %v408_v10 }
 0x10c   :  { %v344_v12 = vpop.xlane.xlu1 %343  ;;  %v333_v13 = vpop.xlane.xlu0 %332 }
 0x10d   :  { %v337_v21 = vsel %vm336_vm2, %v333_v13, 0.0  ;;  %v348_v26 = vsel %vm347_vm3, %v344_v12, 0.0 }
 0x10e   :  { %v339_v25 = vadd.f32 %v458_v19, %v337_v21 }
 0x110   :  { %v350_v29 = vadd.f32 %v348_v26, %v339_v25 }
 0x113   :  { %v355_v15 = vpop.xlane.xlu2 %354 }
 0x114   :  { %v346_v16 = vpop.xlane.xlu1 %345  ;;  %v366_v17 = vpop.xlane.xlu0 %365  ;;  %v359_v28 = vsel %vm358_vm4, %v355_v15, 0.0 }
 0x115   :  { %v349_v30 = vsel %vm347_vm3, %v346_v16, 0.0  ;;  %v361_v34 = vadd.f32 %v359_v28, %v350_v29  ;;  %v370_v35 = vsel %vm369_vm5, %v366_v17, 0.0 }
 0x117   :  { %v372_v40 = vadd.f32 %v370_v35, %v361_v34 }
 0x11b   :  { %v357_v20 = vpop.xlane.xlu2 %356 }
 0x11c   :  { %v368_v22 = vpop.xlane.xlu1 %367  ;;  %v335_v23 = vpop.xlane.xlu0 %334  ;;  %v360_v37 = vsel %vm358_vm4, %v357_v20, 0.0 }
 0x11d   :  { %v338_v24 = vsel %vm336_vm2, %v335_v23, 0.0  ;;  %v371_v41 = vsel %vm369_vm5, %v368_v22, 0.0 }
 0x11e   :  { %v340_v27 = vadd.f32 %v458_v19, %v338_v24 }
 0x120   :  { %v351_v32 = vadd.f32 %v349_v30, %v340_v27 }
 0x122   :  { %v362_v39 = vadd.f32 %v360_v37, %v351_v32 }
 0x123   :  { %v377_v31 = vpop.xlane.xlu2 %376 }
 0x124   :  { %v399_v33 = vpop.xlane.xlu0 %398  ;;  %v388_v36 = vpop.xlane.xlu1 %387  ;;  %v381_v38 = vsel %vm380_vm6, %v377_v31, 0.0  ;;  %v373_v45 = vadd.f32 %v371_v41, %v362_v39 }
 0x125   :  { %v383_v42 = vadd.f32 %v381_v38, %v372_v40  ;;  %v392_v44 = vsel %vm391_vm7, %v388_v36, 0.0  ;;  %v403_v54 = vsel %vm402_vm8, %v399_v33, 0.0 }
 0x127   :  { %v394_v50 = vadd.f32 %v392_v44, %v383_v42 }
 0x129   :  { %v405_v55 = vadd.f32 %v403_v54, %v394_v50 }
 0x12b   :  { %v390_v43 = vpop.xlane.xlu2 %389 }
 0x12c   :  { %v379_v46 = vpop.xlane.xlu0 %378  ;;  %v401_v49 = vpop.xlane.xlu1 %400  ;;  %v393_v51 = vsel %vm391_vm7, %v390_v43, 0.0 }
 0x12d   :  { %v382_v47 = vsel %vm380_vm6, %v379_v46, 0.0  ;;  %v404_v53 = vsel %vm402_vm8, %v401_v49, 0.0 }
 0x12e   :  { %v384_v48 = vadd.f32 %v382_v47, %v373_v45 }
 0x130   :  { %v395_v52 = vadd.f32 %v393_v51, %v384_v48 }
 0x132   :  { %v406_v57 = vadd.f32 %v404_v53, %v395_v52 }
 0x133   :  { %v410_v56 = vpop.xlane.xlu2 %409 }
 0x134   :  { %v414_v58 = vsel %vm413_vm9, %v410_v56, 0.0  ;;  %v412_v59 = vpop.xlane.xlu0 %411 }
 0x135   :  { %v416_v60 = vadd.f32 %v414_v58, %v405_v55  ;;  %v415_v61 = vsel %vm413_vm9, %v412_v59, 0.0 }
 0x136   :  { %v417_v62 = vadd.f32 %v415_v61, %v406_v57 }
 0x137   :  { %419 = vst.msk [vmem:[%s613_s4] sm:$0xff] %vm418_vm10, %v416_v60 }
 0x138   :  { %420 = vst.msk [vmem:[%s613_s4 + $0x8] sm:$0xff] %vm418_vm10, %v417_v62 }
 0x139   :  { %425 = vsyncpa [#allocation3], 1 }
 0x13a   :  { %426 = vsyncpa [#allocation5], 1 }

</bundles_post_ra>
